<compile_context>
chip_gen: v7x
topology: tpu7x:2x2x1
jax: 0.10.0
libtpu: 0.0.40
codegen_flags: <defaults>
</compile_context>

<pallas_src>
import math

import jax
import jax.numpy as jnp
from jax.experimental import pallas as pl
from jax.experimental.pallas import tpu as pltpu

FREQ_EMB_SIZE = 256          # frequency_embedding_size (even -> no zero-pad branch)
HALF = FREQ_EMB_SIZE // 2    # 128 -> lane-aligned
MAX_PERIOD = 10000.0


def _timestep_embedder_kernel(t_ref, w1_ref, b1_ref, w2_ref, b2_ref, out_ref, h_ref):
    """t: (TILE_N,1) f32; w1: (256,Hp); b1: (1,Hp); w2 block: (Hp,TH); b2 block: (1,TH);
    out block: (TILE_N,TH) f32; h scratch: (TILE_N,Hp) in the weight dtype."""

    @pl.when(pl.program_id(1) == 0)
    def _compute_hidden():
        t = t_ref[...].astype(jnp.float32)                                  # (TILE_N, 1)

        # freqs = exp(-log(max_period) * arange(half) / half)               (1, 128)
        idx = jax.lax.broadcasted_iota(jnp.int32, (1, HALF), 1).astype(jnp.float32)
        freqs = jnp.exp((-math.log(MAX_PERIOD) / HALF) * idx)

        args = t * freqs                                                    # (TILE_N, 128)
        # Both halves are 128-lane aligned, so the concat is pure vreg placement;
        # a single K=256 dot keeps the 256-deep MXUs (v6e/v7x) full.
        emb = jnp.concatenate([jnp.cos(args), jnp.sin(args)], axis=-1)      # (TILE_N, 256)

        h = jnp.dot(emb.astype(w1_ref.dtype), w1_ref[...],
                    preferred_element_type=jnp.float32)
        h = h + b1_ref[...].astype(jnp.float32)
        # SiLU in f32 (sigmoid's exp lands on the EUP slot).
        h = h * jax.nn.sigmoid(h)
        h_ref[...] = h.astype(h_ref.dtype)

    out = jnp.dot(h_ref[...], w2_ref[...], preferred_element_type=jnp.float32)
    out_ref[...] = (out + b2_ref[...].astype(jnp.float32)).astype(out_ref.dtype)


def pad_timestep_embedder_params(w1, b1, w2, b2, dtype=None):
    """One-time (init-time) padding of the MLP params to a lane-aligned hidden dim.

    Optionally casts to `dtype` (e.g. jnp.bfloat16) to halve weight HBM traffic.
    Returns (w1_p, b1_p, w2_p, b2_p, hidden) — pass `hidden=hidden` to the forward
    so the output is sliced back to the true width.
    """
    hidden = w1.shape[1]
    hidden_p = 128 * pl.cdiv(hidden, 128)
    dtype = w1.dtype if dtype is None else dtype
    w1_p = jnp.zeros((FREQ_EMB_SIZE, hidden_p), dtype).at[:, :hidden].set(w1.astype(dtype))
    b1_p = jnp.zeros((1, hidden_p), dtype).at[0, :hidden].set(b1.reshape(-1).astype(dtype))
    w2_p = jnp.zeros((hidden_p, hidden_p), dtype).at[:hidden, :hidden].set(w2.astype(dtype))
    b2_p = jnp.zeros((1, hidden_p), dtype).at[0, :hidden].set(b2.reshape(-1).astype(dtype))
    return w1_p, b1_p, w2_p, b2_p, hidden


def _pick_tile_h(hidden_p, desired):
    """Largest multiple of 128 that divides hidden_p and is <= desired (>=128)."""
    k = hidden_p // 128
    desired = max(desired, 128)
    best = 1
    for d in range(1, k + 1):
        if k % d == 0 and d * 128 <= desired:
            best = d
    return 128 * best


def timestep_embedder_forward(t, w1, b1, w2, b2, *, hidden=None, tile_n=256, tile_h=512):
    """t: (N,); w1: (256, H); b1: (H,); w2: (H, H); b2: (H,). Returns (N, hidden) f32.

    Weights/biases may be f32 or bf16 and are used at their native dtype (bf16
    halves HBM traffic; the MXU accumulates in f32 either way).  If H % 128 == 0
    (all common DiT widths) the weights are used as-is with no per-call copies;
    otherwise pad once at init with pad_timestep_embedder_params().
    For training-scale N, raise tile_n (e.g. 512) to amortize per-grid-step
    overhead; note W2 column blocks are re-streamed once per batch tile.
    """
    n = t.shape[0]
    assert w1.shape[0] == FREQ_EMB_SIZE, "first linear must take the 256-d freq embedding"
    hidden_in = w1.shape[1]
    assert w2.shape == (hidden_in, hidden_in)
    if hidden is None:
        hidden = hidden_in
    hidden_p = 128 * pl.cdiv(hidden_in, 128)
    param_dtype = w1.dtype

    if hidden_in == hidden_p:
        # Fast path: no weight copies at all (1152 / 1536 / 2048 / 3072 / ...).
        w1_p = w1
        w2_p = w2
        b1_p = jnp.reshape(b1, (1, hidden_p)).astype(param_dtype)
        b2_p = jnp.reshape(b2, (1, hidden_p)).astype(param_dtype)
    else:
        # Slow path for odd widths: prefer padding once at init (see helper above).
        w1_p, b1_p, w2_p, b2_p, _ = pad_timestep_embedder_params(w1, b1, w2, b2)

    # Batch tiling (sublane-aligned); padded rows are computed but sliced away.
    n8 = 8 * pl.cdiv(n, 8)
    tile = min(max(tile_n, 8), n8)
    tile -= tile % 8
    n_p = tile * pl.cdiv(n8, tile)
    t32 = t.astype(jnp.float32).reshape(n, 1)
    t_p = t32 if n_p == n else jnp.zeros((n_p, 1), jnp.float32).at[:n, :].set(t32)

    # Column tile of the second linear (lane-dense, divides hidden_p).
    th = _pick_tile_h(hidden_p, tile_h)
    grid = (n_p // tile, hidden_p // th)
    grid_i = grid[0]

    itemsize = jnp.dtype(param_dtype).itemsize

    # Explicit VMEM budget: resident W1/b1 (+ double buffers), pipelined W2/b2/out
    # blocks, the hidden scratch, and slack for f32 intermediates.
    vmem_need = (
        2 * tile * 4
        + 2 * FREQ_EMB_SIZE * hidden_p * itemsize
        + 2 * hidden_p * itemsize
        + 2 * hidden_p * th * itemsize
        + 2 * th * itemsize
        + 2 * tile * th * 4
        + tile * hidden_p * itemsize
        + 4 * tile * hidden_p * 4
    )
    vmem_limit = max(32 << 20, min(int(1.5 * vmem_need) + (4 << 20), 64 << 20))

    cost = pl.CostEstimate(
        flops=2 * n_p * hidden_p * (FREQ_EMB_SIZE + hidden_p),
        # cos + sin = 2 per freq element; sigmoid ~ exp + reciprocal per hidden elem.
        transcendentals=n_p * (2 * HALF + 2 * hidden_p) + grid_i * HALF,
        bytes_accessed=(
            (w1_p.size + b1_p.size + b2_p.size) * itemsize
            + w2_p.size * itemsize * grid_i
            + n_p * 4
            + n_p * hidden_p * 4
        ),
    )

    out = pl.pallas_call(
        _timestep_embedder_kernel,
        out_shape=jax.ShapeDtypeStruct((n_p, hidden_p), jnp.float32),
        grid=grid,
        in_specs=[
            pl.BlockSpec((tile, 1), lambda i, j: (i, 0)),                    # t tile
            pl.BlockSpec((FREQ_EMB_SIZE, hidden_p), lambda i, j: (0, 0)),    # W1 resident
            pl.BlockSpec((1, hidden_p), lambda i, j: (0, 0)),                # b1 resident
            pl.BlockSpec((hidden_p, th), lambda i, j: (0, j)),               # W2 column block
            pl.BlockSpec((1, th), lambda i, j: (0, j)),                      # b2 column block
        ],
        out_specs=pl.BlockSpec((tile, th), lambda i, j: (i, j)),
        scratch_shapes=[pltpu.VMEM((tile, hidden_p), param_dtype)],          # SiLU(h) reuse
        compiler_params=pltpu.CompilerParams(
            dimension_semantics=("parallel", "arbitrary"),
            vmem_limit_bytes=vmem_limit,
        ),
        cost_estimate=cost,
    )(t_p, w1_p, b1_p, w2_p, b2_p)

    return out[:n, :hidden]


def _reference(t, w1, b1, w2, b2):
    """Pure-JAX reference matching the PyTorch module semantics (f32 math)."""
    freqs = jnp.exp(-math.log(MAX_PERIOD) * jnp.arange(HALF, dtype=jnp.float32) / HALF)
    args = t.astype(jnp.float32)[:, None] * freqs[None]
    emb = jnp.concatenate([jnp.cos(args), jnp.sin(args)], axis=-1)
    h = emb @ w1.astype(jnp.float32) + b1.reshape(-1).astype(jnp.float32)
    h = h * jax.nn.sigmoid(h)
    return h @ w2.astype(jnp.float32) + b2.reshape(-1).astype(jnp.float32)


if __name__ == "__main__":
    key = jax.random.PRNGKey(0)
    keys = jax.random.split(key, 10)

    # --- Test 1: f32 params, non-lane-aligned hidden (exercises the padding path). ---
    N, HIDDEN = 8, 32
    t = jax.random.uniform(keys[0], (N,), jnp.float32, minval=0.0, maxval=1000.0)
    w1 = jax.random.normal(keys[1], (FREQ_EMB_SIZE, HIDDEN), jnp.float32) * 0.02
    b1 = jax.random.normal(keys[2], (HIDDEN,), jnp.float32) * 0.02
    w2 = jax.random.normal(keys[3], (HIDDEN, HIDDEN), jnp.float32) * 0.02
    b2 = jax.random.normal(keys[4], (HIDDEN,), jnp.float32) * 0.02

    out = timestep_embedder_forward(t, w1, b1, w2, b2)
    jax.block_until_ready(out)
    ref = _reference(t, w1, b1, w2, b2)
    assert out.shape == (N, HIDDEN)
    assert jnp.allclose(out, ref, atol=2e-3, rtol=2e-3), "f32 mismatch vs reference"

    # --- Test 2: bf16 params, lane-aligned hidden, multi-step (2, 2) grid with
    #             hidden-scratch reuse across W2 column tiles. ---
    N2, HIDDEN2 = 16, 256
    t2 = jax.random.uniform(keys[5], (N2,), jnp.float32, minval=0.0, maxval=1000.0)
    w1b = (jax.random.normal(keys[6], (FREQ_EMB_SIZE, HIDDEN2), jnp.float32) * 0.02).astype(jnp.bfloat16)
    b1b = (jax.random.normal(keys[7], (HIDDEN2,), jnp.float32) * 0.02).astype(jnp.bfloat16)
    w2b = (jax.random.normal(keys[8], (HIDDEN2, HIDDEN2), jnp.float32) * 0.02).astype(jnp.bfloat16)
    b2b = (jax.random.normal(keys[9], (HIDDEN2,), jnp.float32) * 0.02).astype(jnp.bfloat16)

    out2 = timestep_embedder_forward(t2, w1b, b1b, w2b, b2b, tile_n=8, tile_h=128)
    jax.block_until_ready(out2)
    ref2 = _reference(t2, w1b, b1b, w2b, b2b)
    assert out2.shape == (N2, HIDDEN2)
    assert jnp.allclose(out2, ref2, atol=3e-2, rtol=3e-2), "bf16 mismatch vs reference"

    print("KERNEL_OK")
</pallas_src>

<mosaic_0001>
module attributes {stable_mosaic.version = 11 : i64} {
  func.func @_timestep_embedder_kernel(%arg0: i32, %arg1: i32, %arg2: memref<8x1xf32, #tpu.memory_space<vmem>>, %arg3: memref<256x128xf32, #tpu.memory_space<vmem>>, %arg4: memref<1x128xf32, #tpu.memory_space<vmem>>, %arg5: memref<128x128xf32, #tpu.memory_space<vmem>>, %arg6: memref<1x128xf32, #tpu.memory_space<vmem>>, %arg7: memref<8x128xf32, #tpu.memory_space<vmem>>, %arg8: memref<8x128xf32, #tpu.memory_space<vmem>>) attributes {dimension_semantics = [#tpu.dimension_semantics<parallel>, #tpu.dimension_semantics<arbitrary>], iteration_bounds = array<i64: 1, 1>, scalar_prefetch = 0 : i64, scratch_operands = 1 : i64, tpu.core_type = #tpu.core_type<tc>, window_params = [{transform_indices = @transform_0, window_bounds = array<i64: 8, 1>}, {pipeline_mode = #tpu.pipeline_mode<synchronous>, transform_indices = @transform_1, window_bounds = array<i64: 256, 128>}, {pipeline_mode = #tpu.pipeline_mode<synchronous>, transform_indices = @transform_2, window_bounds = array<i64: 1, 128>}, {transform_indices = @transform_3, window_bounds = array<i64: 128, 128>}, {transform_indices = @transform_4, window_bounds = array<i64: 1, 128>}, {transform_indices = @transform_5, window_bounds = array<i64: 8, 128>}]} {
    %c0_i32 = arith.constant 0 : i32
    %0 = arith.cmpi eq, %arg1, %c0_i32 : i32
    %1 = arith.extui %0 : i1 to i32
    %c0_i32_0 = arith.constant 0 : i32
    %2 = arith.cmpi ne, %1, %c0_i32_0 : i32
    scf.if %2 {
      %c0_8 = arith.constant 0 : index
      %c0_9 = arith.constant 0 : index
      %10 = vector.load %arg2[%c0_8, %c0_9] : memref<8x1xf32, #tpu.memory_space<vmem>>, vector<8x1xf32>
      %11 = tpu.iota {dimensions = array<i32: 1>} : vector<1x128xi32>
      %12 = arith.sitofp %11 : vector<1x128xi32> to vector<1x128xf32>
      %cst_10 = arith.constant -0.0719557852 : f32
      %13 = vector.broadcast %cst_10 : f32 to vector<1x128xf32>
      %14 = arith.mulf %13, %12 : vector<1x128xf32>
      %15 = math.exp %14 : vector<1x128xf32>
      %16 = vector.broadcast %10 : vector<8x1xf32> to vector<8x128xf32>
      %17 = vector.broadcast %15 : vector<1x128xf32> to vector<8x128xf32>
      %18 = arith.mulf %16, %17 : vector<8x128xf32>
      %19 = math.cos %18 : vector<8x128xf32>
      %20 = math.sin %18 : vector<8x128xf32>
      %21 = tpu.concatenate %19, %20 in 1 : vector<8x128xf32>, vector<8x128xf32> -> vector<8x256xf32>
      %c0_11 = arith.constant 0 : index
      %c0_12 = arith.constant 0 : index
      %22 = vector.load %arg3[%c0_11, %c0_12] : memref<256x128xf32, #tpu.memory_space<vmem>>, vector<256x128xf32>
      %cst_13 = arith.constant dense<0.000000e+00> : vector<8x128xf32>
      %23 = tpu.matmul %21, %22, %cst_13 {dimension_numbers = #tpu.dot_dimension_numbers<[1], [0], [0], [1], [0, 0, 1, 1], [], []>} : vector<8x256xf32>, vector<256x128xf32>, vector<8x128xf32> -> vector<8x128xf32>
      %c0_14 = arith.constant 0 : index
      %c0_15 = arith.constant 0 : index
      %24 = vector.load %arg4[%c0_14, %c0_15] : memref<1x128xf32, #tpu.memory_space<vmem>>, vector<1x128xf32>
      %25 = vector.broadcast %24 : vector<1x128xf32> to vector<8x128xf32>
      %26 = arith.addf %23, %25 : vector<8x128xf32>
      %27 = arith.negf %26 : vector<8x128xf32>
      %28 = math.exp %27 : vector<8x128xf32>
      %cst_16 = arith.constant 1.000000e+00 : f32
      %29 = vector.broadcast %cst_16 : f32 to vector<8x128xf32>
      %30 = arith.addf %29, %28 : vector<8x128xf32>
      %31 = arith.divf %29, %30 : vector<8x128xf32>
      %32 = arith.mulf %26, %31 : vector<8x128xf32>
      %c0_17 = arith.constant 0 : index
      %c0_18 = arith.constant 0 : index
      %33 = vector.load %arg8[%c0_17, %c0_18] : memref<8x128xf32, #tpu.memory_space<vmem>>, vector<8x128xf32>
      tpu.vector_store %arg8[%c0_17, %c0_18], %32 {strides = array<i32>} : memref<8x128xf32, #tpu.memory_space<vmem>>, vector<8x128xf32>,
    } else {
    }
    %c0 = arith.constant 0 : index
    %c0_1 = arith.constant 0 : index
    %3 = vector.load %arg8[%c0, %c0_1] : memref<8x128xf32, #tpu.memory_space<vmem>>, vector<8x128xf32>
    %c0_2 = arith.constant 0 : index
    %c0_3 = arith.constant 0 : index
    %4 = vector.load %arg5[%c0_2, %c0_3] : memref<128x128xf32, #tpu.memory_space<vmem>>, vector<128x128xf32>
    %cst = arith.constant dense<0.000000e+00> : vector<8x128xf32>
    %5 = tpu.matmul %3, %4, %cst {dimension_numbers = #tpu.dot_dimension_numbers<[1], [0], [0], [1], [0, 0, 1, 1], [], []>} : vector<8x128xf32>, vector<128x128xf32>, vector<8x128xf32> -> vector<8x128xf32>
    %c0_4 = arith.constant 0 : index
    %c0_5 = arith.constant 0 : index
    %6 = vector.load %arg6[%c0_4, %c0_5] : memref<1x128xf32, #tpu.memory_space<vmem>>, vector<1x128xf32>
    %7 = vector.broadcast %6 : vector<1x128xf32> to vector<8x128xf32>
    %8 = arith.addf %5, %7 : vector<8x128xf32>
    %c0_6 = arith.constant 0 : index
    %c0_7 = arith.constant 0 : index
    %9 = vector.load %arg7[%c0_6, %c0_7] : memref<8x128xf32, #tpu.memory_space<vmem>>, vector<8x128xf32>
    tpu.vector_store %arg7[%c0_6, %c0_7], %8 {strides = array<i32>} : memref<8x128xf32, #tpu.memory_space<vmem>>, vector<8x128xf32>,
    return
  }
  func.func @transform_0(%arg0: i32, %arg1: i32) -> (i32, i32) {
    %c0_i32 = arith.constant 0 : i32
    %c0_i32_0 = arith.constant 0 : i32
    return %arg0, %c0_i32 : i32, i32
  }
  func.func @transform_1(%arg0: i32, %arg1: i32) -> (i32, i32) {
    %c0_i32 = arith.constant 0 : i32
    %c0_i32_0 = arith.constant 0 : i32
    %c0_i32_1 = arith.constant 0 : i32
    return %c0_i32, %c0_i32_0 : i32, i32
  }
  func.func @transform_2(%arg0: i32, %arg1: i32) -> (i32, i32) {
    %c0_i32 = arith.constant 0 : i32
    %c0_i32_0 = arith.constant 0 : i32
    %c0_i32_1 = arith.constant 0 : i32
    return %c0_i32, %c0_i32_0 : i32, i32
  }
  func.func @transform_3(%arg0: i32, %arg1: i32) -> (i32, i32) {
    %c0_i32 = arith.constant 0 : i32
    %c0_i32_0 = arith.constant 0 : i32
    return %c0_i32, %arg1 : i32, i32
  }
  func.func @transform_4(%arg0: i32, %arg1: i32) -> (i32, i32) {
    %c0_i32 = arith.constant 0 : i32
    %c0_i32_0 = arith.constant 0 : i32
    return %c0_i32, %arg1 : i32, i32
  }
  func.func @transform_5(%arg0: i32, %arg1: i32) -> (i32, i32) {
    %c0_i32 = arith.constant 0 : i32
    return %arg0, %arg1 : i32, i32
  }
}

</mosaic_0001>

<bundles_post_ra>
// kernel: tpu_custom_call.1
= control target key start
LH: loop header
LB: loop body
LE: loop exit
PB: predicated region body
PF: predicated region fallthrough
CT: control target
= control target key end

     0   :  { %10 = vsyncpa [#allocation4], 0  ;;  %s868_s0 = inlined_call_operand.vmem [shape: f32[8,1], index: 0, kind: input, shape index: {}]   ;;  %s869_s1 = inlined_call_operand.hbm [shape: f32[256,128], index: 1, kind: input, shape index: {}]   ;;  %s870_s2 = inlined_call_operand.vmem [shape: f32[1,128], index: 2, kind: input, shape index: {}]   ;;  %s871_s3 = inlined_call_operand.hbm [shape: f32[128,128], index: 3, kind: input, shape index: {}]   ;;  %s872_s4 = inlined_call_operand.vmem [shape: f32[1,128], index: 4, kind: input, shape index: {}]   ;;  %s873_s5 = inlined_call_operand.hbm [shape: f32[8,128], index: 5, kind: output, shape index: {}]  }
   0x1   :  { %11 = vsyncpa [#allocation7], 0 }
   0x2   :  { %12 = vsyncpa [#allocation5], 0  ;;  %s757_s18 = smov [#allocation3]   ;;  %s685_s22 = scalar_lea.hbm %s869_s1, 4096 }
   0x3   :  { %s20_s19 = sshll.u32 %s757_s18, 4  ;;  %p686_p0 = scmp.ne.s32.totalorder %s869_s1, %s685_s22  ;;  %s21_s19 = int_to_ptr.vmem [resolvable:$true] %s20_s19 }
   0x4   :  { %p689_p1 = scmp.lt.u32.totalorder %s685_s22, %s869_s1 }
   0x6   :  { %p691_p2 = pnand %p689_p1, %p686_p0 }
   0x8   :  { %694 = shalt.err (!%p691_p2)
}
   0x9   :  { %s695_s27 = scalar_lea.vmem %s21_s19, 4096  ;;  %p700_p4 = scmp.lt.s32.totalorder %s21_s19, %s21_s19 }
   0xa   :  { %p696_p3 = scmp.ne.s32.totalorder %s21_s19, %s695_s27  ;;  %p701_p5 = scmp.lt.s32.totalorder %s695_s27, %s695_s27 }
   0xc   :  { %p702_p6 = por %p701_p5, %p700_p4 }
   0xe   :  { %p703_p7 = pnand %p702_p6, %p696_p3 }
  0x10   :  { %706 = shalt.err (!%p703_p7)
}
  0x11   :  { %s758_s28 = smov 128   ;;  %s759_s29 = smov 8  }
  0x12   :  { %26 = dma.hbm_to_vmem [thread:$0]  %s869_s1, 4096, %s21_s19, [#allocation4], %s758_s28, %s758_s28, %s759_s29  }
  0x13   :  { %s760_s7 = smov [#allocation6]   ;;  %s707_s11 = scalar_lea.hbm %s871_s3, 2048 }
  0x14   :  { %s34_s8 = sshll.u32 %s760_s7, 4  ;;  %p708_p8 = scmp.ne.s32.totalorder %s871_s3, %s707_s11  ;;  %s35_s8 = int_to_ptr.vmem [resolvable:$true] %s34_s8 }
  0x15   :  { %p711_p9 = scmp.lt.u32.totalorder %s707_s11, %s871_s3 }
  0x17   :  { %p713_p10 = pnand %p711_p9, %p708_p8 }
  0x19   :  { %716 = shalt.err (!%p713_p10)
}
  0x1a   :  { %s717_s16 = scalar_lea.vmem %s35_s8, 2048  ;;  %p722_p12 = scmp.lt.s32.totalorder %s35_s8, %s35_s8 }
  0x1b   :  { %p718_p11 = scmp.ne.s32.totalorder %s35_s8, %s717_s16  ;;  %p723_p13 = scmp.lt.s32.totalorder %s717_s16, %s717_s16 }
  0x1d   :  { %p724_p0 = por %p723_p13, %p722_p12 }
  0x1f   :  { %p725_p1 = pnand %p724_p0, %p718_p11 }
  0x21   :  { %728 = shalt.err (!%p725_p1)
}
  0x22   :  { %40 = dma.hbm_to_vmem [thread:$0]  %s871_s3, 2048, %s35_s8, [#allocation7], %s758_s28, %s758_s28, %s759_s29  }
  0x23   :  { %751 = dma.done.wait [#allocation4], 4096  }
  0x24   :  { %752 = vsyncadd [#allocation4], 4294963200 }
  0x25   :  { %753 = dma.done.wait [#allocation7], 2048  }
  0x26   :  { %754 = vsyncadd [#allocation7], 4294965248  ;;  %v761_v0 = vmov 0   ;;  %v53_v1 = vld [vmem:[%s868_s0] sm:$0xff]  ;;  %v290_v3 = vld [vmem:[#allocation3 + $0x88] sm:$0xff]  ;;  %v54_v50 = vlaneseq  ;;  %s771_s22 = smov [#allocation8]  }
  0x27   :  { %674 = vset.pattern.permute.xlu0 %v761_v0  ;;  %v289_v2 = vld [vmem:[#allocation3 + $0x80] sm:$0xff]  ;;  %v274_v6 = vld [vmem:[#allocation3 + $0x8] sm:$0xff]  ;;  %v291_v7 = vld [vmem:[#allocation3 + $0x90] sm:$0xff]  ;;  %s491_s23 = sshll.u32 %s771_s22, 4  ;;  %s492_s23 = int_to_ptr.vmem [resolvable:$true] %s491_s23 }
  0x28   :  { %62 = vperm.xlu0 %674, %v53_v1   ;;  %v273_v4 = vld [vmem:[#allocation3] sm:$0xff]  ;;  %v599_v5 = vpack.c.bf16 %v290_v3, %v289_v2  ;;  %v292_v8 = vld [vmem:[#allocation3 + $0x98] sm:$0xff]  ;;  %v275_v11 = vld [vmem:[#allocation3 + $0x10] sm:$0xff]  ;;  %v55_v51 = vand.u32 127, %v54_v50  ;;  %p734_p3 = scmp.lt.s32.totalorder %s492_s23, %s492_s23 }
  0x29   :  { %v601_v9 = vpack.c.bf16 %v274_v6, %v273_v4  ;;  %v603_v10 = vpack.c.bf16 %v292_v8, %v291_v7  ;;  %v276_v12 = vld [vmem:[#allocation3 + $0x18] sm:$0xff]  ;;  %v293_v13 = vld [vmem:[#allocation3 + $0xa0] sm:$0xff]  ;;  %v294_v14 = vld [vmem:[#allocation3 + $0xa8] sm:$0xff]  ;;  %v763_v7 = vmov 920167782  }
  0x2a   :  { %600 = vmatprep.subr.bf16.mxu0 %v599_v5  ;;  %v605_v15 = vpack.c.bf16 %v276_v12, %v275_v11  ;;  %v607_v16 = vpack.c.bf16 %v294_v14, %v293_v13  ;;  %v277_v17 = vld [vmem:[#allocation3 + $0x20] sm:$0xff]  ;;  %v278_v18 = vld [vmem:[#allocation3 + $0x28] sm:$0xff]  ;;  %v295_v19 = vld [vmem:[#allocation3 + $0xb0] sm:$0xff]  ;;  %v56_v52 = vcvt.s32.f32 %v55_v51  ;;  %v762_v5 = vmov 2102212464  }
  0x2b   :  { %602 = vmatpush3.bf16.msra.mxu0 %v601_v9  ;;  %v296_v20 = vld [vmem:[#allocation3 + $0xb8] sm:$0xff]  ;;  %v609_v21 = vpack.c.bf16 %v278_v18, %v277_v17  ;;  %v279_v23 = vld [vmem:[#allocation3 + $0x30] sm:$0xff]  ;;  %v297_v25 = vld [vmem:[#allocation3 + $0xc0] sm:$0xff]  ;;  %v764_v11 = vmov 1326507024  }
  0x2c   :  { %604 = vmatprep.subr.bf16.mxu0 %v603_v10  ;;  %v611_v22 = vpack.c.bf16 %v296_v20, %v295_v19  ;;  %v280_v24 = vld [vmem:[#allocation3 + $0x38] sm:$0xff]  ;;  %v298_v26 = vld [vmem:[#allocation3 + $0xc8] sm:$0xff]  ;;  %v281_v29 = vld [vmem:[#allocation3 + $0x40] sm:$0xff]  ;;  %v57_v53 = vmul.f32 -0.071955785, %v56_v52 }
  0x2d   :  { %v613_v27 = vpack.c.bf16 %v280_v24, %v279_v23  ;;  %v615_v28 = vpack.c.bf16 %v298_v26, %v297_v25  ;;  %v282_v30 = vld [vmem:[#allocation3 + $0x48] sm:$0xff]  ;;  %v299_v31 = vld [vmem:[#allocation3 + $0xd0] sm:$0xff]  ;;  %v300_v32 = vld [vmem:[#allocation3 + $0xd8] sm:$0xff]  ;;  %v765_v13 = vmov 683565275  }
  0x2e   :  { %v617_v33 = vpack.c.bf16 %v282_v30, %v281_v29  ;;  %v619_v34 = vpack.c.bf16 %v300_v32, %v299_v31  ;;  %v283_v35 = vld [vmem:[#allocation3 + $0x50] sm:$0xff]  ;;  %v284_v36 = vld [vmem:[#allocation3 + $0x58] sm:$0xff]  ;;  %v301_v37 = vld [vmem:[#allocation3 + $0xe0] sm:$0xff]  ;;  %v58_v54 = vmul.f32 1.442695, %v57_v53 }
  0x2f   :  { %606 = vmatpush3.bf16.msra.mxu0 %v605_v15  ;;  %v302_v38 = vld [vmem:[#allocation3 + $0xe8] sm:$0xff]  ;;  %v621_v39 = vpack.c.bf16 %v284_v36, %v283_v35  ;;  %v285_v41 = vld [vmem:[#allocation3 + $0x60] sm:$0xff]  ;;  %v303_v43 = vld [vmem:[#allocation3 + $0xf0] sm:$0xff]  ;;  %v766_v15 = vmov 2475754826  }
  0x30   :  { %608 = vmatprep.subr.bf16.mxu0 %v607_v16  ;;  %v623_v40 = vpack.c.bf16 %v302_v38, %v301_v37  ;;  %v286_v42 = vld [vmem:[#allocation3 + $0x68] sm:$0xff]  ;;  %v304_v44 = vld [vmem:[#allocation3 + $0xf8] sm:$0xff]  ;;  %v287_v47 = vld [vmem:[#allocation3 + $0x70] sm:$0xff]  ;;  %675 = vpow2.f32 %v58_v54  ;;  %v767_v18 = vmov 2131351028  }
  0x31   :  { %v625_v45 = vpack.c.bf16 %v286_v42, %v285_v41  ;;  %v627_v46 = vpack.c.bf16 %v304_v44, %v303_v43  ;;  %v288_v48 = vld [vmem:[#allocation3 + $0x78] sm:$0xff] }
  0x32   :  { %v629_v49 = vpack.c.bf16 %v288_v48, %v287_v47 }
  0x33   :  { %610 = vmatpush3.bf16.msra.mxu0 %v609_v21 }
  0x34   :  { %612 = vmatprep.subr.bf16.mxu0 %v611_v22 }
  0x37   :  { %614 = vmatpush3.bf16.msra.mxu0 %v613_v27 }
  0x38   :  { %616 = vmatprep.subr.bf16.mxu0 %v615_v28 }
  0x3a   :  { %v676_v55 = vpop.eup %675 }
  0x3b   :  { %618 = vmatpush3.bf16.msra.mxu0 %v617_v33 }
  0x3c   :  { %620 = vmatprep.subr.bf16.mxu0 %v619_v34 }
  0x3f   :  { %622 = vmatpush3.bf16.msra.mxu0 %v621_v39 }
  0x40   :  { %624 = vmatprep.subr.bf16.mxu0 %v623_v40 }
  0x43   :  { %626 = vmatpush3.bf16.msra.mxu0 %v625_v45 }
  0x44   :  { %628 = vmatprep.subr.bf16.mxu0 %v627_v46 }
  0x47   :  { %630 = vmatpush3.bf16.msra.mxu0 %v629_v49 }
  0xa7   :  { %v63_v56 = vpop.permute.xlu0 %62 }
  0xa8   :  { %v829_v57 = vmul.f32 %v676_v55, %v63_v56 }
  0xaa   :  { %v69_v58 = vand.u32 2139095040, %v829_v57  ;;  %v66_v59 = vand.u32 2147483647, %v829_v57  ;;  %vm68_vm7 = vcmp.lt.s32.totalorder %v829_v57, 0  ;;  %vm158_vm15 = vweird.f32 %v829_v57 }
  0xac   :  { %v70_v60 = vshrl.u32 %v69_v58, 23  ;;  %v73_v62 = vand.u32 8388607, %v66_v59  ;;  %vm67_vm8 = vcmp.le.f32.partialorder %v66_v59, 0.7853982 }
  0xae   :  { %v501_v61 = vadd.s32 4294967169, %v70_v60  ;;  %v74_v1 = vor.u32 8388608, %v73_v62 }
  0xb0   :  { %v76_v63 = vadd.s32 1, %v501_v61  ;;  %v114_v9 = vshll.u32 %v74_v1, 8 }
  0xb2   :  { %vm77_vm0 = vcmp.gt.s32.totalorder %v76_v63, 0 }
  0xb3   :  { %v78_v0 = vsel %vm77_vm0, %v76_v63, 0  ;;  %vm769_vm0 = vmmov 0  }
  0xb4   :  { %v80_v2 = vand.u32 31, %v78_v0  ;;  %v79_v3 = vshrl.u32 %v78_v0, 5 }
  0xb6   :  { %v81_v4 = vsub.s32 32, %v80_v2  ;;  %v92_v6 = vshll.u32 %v762_v5, %v80_v2  ;;  %v95_v8 = vshll.u32 %v763_v7, %v80_v2  ;;  %v83_v14 = vshll.u32 %v765_v13, %v80_v2 }
  0xb7   :  { %v86_v17 = vshll.u32 %v766_v15, %v80_v2  ;;  %v89_v20 = vshll.u32 %v767_v18, %v80_v2  ;;  %vm101_vm1 = vcmp.lt.s32.totalorder %v79_v3, 4  ;;  %vm98_vm2 = vcmp.lt.s32.totalorder %v79_v3, 1 }
  0xb8   :  { %v93_v10 = vshrl.u32 %v763_v7, %v81_v4  ;;  %v96_v12 = vshrl.u32 %v764_v11, %v81_v4  ;;  %v84_v16 = vshrl.u32 %v766_v15, %v81_v4  ;;  %v87_v19 = vshrl.u32 %v767_v18, %v81_v4 }
  0xb9   :  { %v90_v21 = vshrl.u32 %v762_v5, %v81_v4  ;;  %v82_v25 = vshrl.u32 %v765_v13, %v81_v4  ;;  %vm99_vm3 = vcmp.lt.s32.totalorder %v79_v3, 2  ;;  %vm100_vm4 = vcmp.lt.s32.totalorder %v79_v3, 3 }
  0xba   :  { %v94_v22 = vor.u32 %v93_v10, %v92_v6  ;;  %v97_v23 = vor.u32 %v96_v12, %v95_v8  ;;  %v85_v24 = vor.u32 %v84_v16, %v83_v14  ;;  %v88_v26 = vor.u32 %v87_v19, %v86_v17 }
  0xbb   :  { %v91_v27 = vor.u32 %v90_v21, %v89_v20 }
  0xbc   :  { %v107_v28 = vsel %vm101_vm1, %v94_v22, 920167782  ;;  %v111_v29 = vsel %vm101_vm1, %v97_v23, 1326507024  ;;  %v106_v31 = vsel %vm98_vm2, %v85_v24, %v88_v26  ;;  %v102_v34 = vsel %vm98_vm2, %v82_v25, %v85_v24 }
  0xbd   :  { %v103_v30 = vsel %vm101_vm1, %v91_v27, 2102212464  ;;  %v108_v32 = vsel %vm100_vm4, %v91_v27, %v107_v28  ;;  %v110_v33 = vsel %vm98_vm2, %v88_v26, %v91_v27  ;;  %v112_v37 = vsel %vm100_vm4, %v94_v22, %v111_v29  ;;  %v391_v27 = vld [vmem:[#allocation6] sm:$0xff]  ;;  %v392_v28 = vld [vmem:[#allocation6 + $0x8] sm:$0xff] }
  0xbe   :  { %v104_v35 = vsel %vm100_vm4, %v88_v26, %v103_v30  ;;  %v109_v36 = vsel %vm99_vm3, %v106_v31, %v108_v32  ;;  %v113_v38 = vsel %vm99_vm3, %v110_v33, %v112_v37  ;;  %v632_v29 = vpack.c.bf16 %v392_v28, %v391_v27  ;;  %v393_v31 = vld [vmem:[#allocation6 + $0x10] sm:$0xff]  ;;  %v394_v32 = vld [vmem:[#allocation6 + $0x18] sm:$0xff] }
  0xbf   :  { %v835_v39 = vmul.u32.u64.low %v114_v9, %v109_v36  ;;  %v836_v40 = vmul.u32.u64.high %v114_v9, %v109_v36, %v835_v39  ;;  %v838_v41 = vmul.u32.u64.low %v114_v9, %v113_v38  ;;  %v839_v42 = vmul.u32.u64.high %v114_v9, %v113_v38, %v838_v41  ;;  %v397_v36 = vld [vmem:[#allocation6 + $0x30] sm:$0xff]  ;;  %v398_v37 = vld [vmem:[#allocation6 + $0x38] sm:$0xff] }
  0xc0   :  { %v105_v43 = vsel %vm99_vm3, %v102_v34, %v104_v35  ;;  %v768_v30 = vmov 0.0|0.0   ;;  %v635_v33 = vpack.c.bf16 %v394_v32, %v393_v31  ;;  %v395_v34 = vld [vmem:[#allocation6 + $0x20] sm:$0xff]  ;;  %v641_v38 = vpack.c.bf16 %v398_v37, %v397_v36 }
  0xc1   :  { %v124_v44 = vadd.s32 1, %v836_v40  ;;  %v121_v45 = vmul.u32 %v114_v9, %v105_v43  ;;  %vm123_vm5 = vc.u32 %v839_v42, %v835_v39  ;;  %v122_v58 = vadd.s32 %v835_v39, %v839_v42  ;;  %631 = vmatprep.subr.bf16.mxu1 %v768_v30  ;;  %v399_v39 = vld [vmem:[#allocation6 + $0x40] sm:$0xff]  ;;  %v401_v42 = vld [vmem:[#allocation6 + $0x50] sm:$0xff]  ;;  %v402_v43 = vld [vmem:[#allocation6 + $0x58] sm:$0xff] }
  0xc2   :  { %633 = vmatpush3.bf16.msra.mxu1 %v632_v29 }
  0xc3   :  { %v125_v46 = vsel %vm123_vm5, %v124_v44, %v836_v40  ;;  %634 = vmatprep.subr.bf16.mxu1 %v768_v30  ;;  %v400_v40 = vld [vmem:[#allocation6 + $0x48] sm:$0xff]  ;;  %v647_v44 = vpack.c.bf16 %v402_v43, %v401_v42 }
  0xc4   :  { %v126_v47 = vadd.s32 %v125_v46, %v121_v45  ;;  %v644_v41 = vpack.c.bf16 %v400_v40, %v399_v39  ;;  %v403_v45 = vld [vmem:[#allocation6 + $0x60] sm:$0xff]  ;;  %v404_v46 = vld [vmem:[#allocation6 + $0x68] sm:$0xff] }
  0xc6   :  { %v127_v48 = vadd.s32 536870912, %v126_v47  ;;  %636 = vmatpush3.bf16.msra.mxu1 %v635_v33 }
  0xc7   :  { %637 = vmatprep.subr.bf16.mxu1 %v768_v30 }
  0xc8   :  { %v128_v49 = vshrl.u32 %v127_v48, 30  ;;  %v650_v48 = vpack.c.bf16 %v404_v46, %v403_v45 }
  0xca   :  { %v129_v50 = vshll.u32 %v128_v49, 30  ;;  %v152_v7 = vsub.s32 4, %v128_v49 }
  0xcc   :  { %v130_v51 = vsub.s32 %v126_v47, %v129_v50  ;;  %v153_v10 = vsel %vm68_vm7, %v152_v7, %v128_v49  ;;  %v770_v47 = vmov 0.0   ;;  %v405_v49 = vld [vmem:[#allocation6 + $0x70] sm:$0xff]  ;;  %v406_v50 = vld [vmem:[#allocation6 + $0x78] sm:$0xff] }
  0xcd   :  { %v155_v12 = vsel %vm67_vm8, 0, %v153_v10  ;;  %596 = vmatprep.mubr.msk.f32.mxu1 %vm769_vm0, %v770_v47 }
  0xce   :  { %v132_v52 = vsub.s32 0, %v130_v51  ;;  %v262_v13 = vadd.s32 3, %v155_v12  ;;  %v159_v15 = vand.u32 3, %v155_v12 }
  0xd0   :  { %v502_v53 = vmin.u32 %v132_v52, %v130_v51  ;;  %v263_v14 = vand.u32 3, %v262_v13  ;;  %vm164_vm10 = vcmp.eq.s32.totalorder %v159_v15, 2  ;;  %vm161_vm12 = vcmp.eq.s32.totalorder %v159_v15, 0 }
  0xd1   :  { %vm160_vm14 = vcmp.lt.s32.totalorder %v159_v15, 2 }
  0xd2   :  { %v134_v54 = vclz %v502_v53  ;;  %vm268_vm9 = vcmp.eq.s32.totalorder %v263_v14, 2  ;;  %vm265_vm11 = vcmp.eq.s32.totalorder %v263_v14, 0  ;;  %vm264_vm13 = vcmp.lt.s32.totalorder %v263_v14, 2  ;;  %v509_v53 = vld [vmem:[%s870_s2] ss:$0 sm:$0xff]  ;;  %s729_s2 = scalar_lea.vmem %s492_s23, 128 }
  0xd3   :  { %p730_p2 = scmp.ne.s32.totalorder %s492_s23, %s729_s2  ;;  %p735_p4 = scmp.lt.s32.totalorder %s729_s2, %s729_s2 }
  0xd4   :  { %v503_v55 = vadd.s32 4294967294, %v134_v54 }
  0xd5   :  { %p736_p5 = por %p735_p4, %p734_p3 }
  0xd6   :  { %vm504_vm6 = vcmp.lt.s32.totalorder %v503_v55, 0 }
  0xd7   :  { %v137_v56 = vsel %vm504_vm6, 0, %v503_v55  ;;  %p737_p6 = pnand %p736_p5, %p730_p2 }
  0xd8   :  { %v138_v60 = vsub.s32 32, %v137_v56  ;;  %v142_v61 = vsub.s32 4294967266, %v137_v56  ;;  %v139_v62 = vshll.u32 %v130_v51, %v137_v56  ;;  %v653_v51 = vpack.c.bf16 %v406_v50, %v405_v49 }
  0xda   :  { %v140_v63 = vshrl.u32 %v122_v58, %v138_v60  ;;  %v143_v0 = vadd.s32 127, %v142_v61 }
  0xdc   :  { %v141_v1 = vor.u32 %v140_v63, %v139_v62  ;;  %v144_v2 = vshll.u32 %v143_v0, 23  ;;  %v511_v0 = vld [vmem:[%s872_s4] ss:$0 sm:$0xff] }
  0xde   :  { %v145_v3 = vor.u32 4788187, %v144_v2  ;;  %v148_v5 = vcvt.s32.f32 %v141_v1 }
  0xe0   :  { %v146_v4 = vand.u32 2147483647, %v145_v3 }
  0xe2   :  { %v149_v6 = vmul.f32 %v148_v5, %v146_v4 }
  0xe4   :  { %v150_v8 = vxor.u32 2147483648, %v149_v6 }
  0xe6   :  { %v151_v9 = vsel %vm68_vm7, %v150_v8, %v149_v6 }
  0xe7   :  { %v154_v11 = vsel %vm67_vm8, %v829_v57, %v151_v9  ;;  %v396_v57 = vld [vmem:[#allocation6 + $0x28] sm:$0xff] }
  0xe8   :  { %677 = vcosq.f32 %v154_v11  ;;  %v638_v35 = vpack.c.bf16 %v396_v57, %v395_v34 }
  0xe9   :  { %679 = vsinq.f32 %v154_v11 }
  0xea   :  { %639 = vmatpush3.bf16.msra.mxu1 %v638_v35 }
  0xeb   :  { %640 = vmatprep.subr.bf16.mxu1 %v768_v30 }
  0xee   :  { %642 = vmatpush3.bf16.msra.mxu1 %v641_v38 }
  0xef   :  { %643 = vmatprep.subr.bf16.mxu1 %v768_v30 }
  0xf2   :  { %v678_v16 = vpop.eup %677  ;;  %645 = vmatpush3.bf16.msra.mxu1 %v644_v41 }
  0xf3   :  { %v680_v17 = vpop.eup %679  ;;  %v165_v18 = vxor.u32 2147483648, %v678_v16  ;;  %646 = vmatprep.subr.bf16.mxu1 %v768_v30 }
  0xf4   :  { %v162_v19 = vxor.u32 2147483648, %v680_v17 }
  0xf5   :  { %v270_v20 = vsel %vm268_vm9, %v165_v18, %v680_v17  ;;  %v166_v59 = vsel %vm164_vm10, %v165_v18, %v680_v17 }
  0xf6   :  { %v267_v21 = vsel %vm265_vm11, %v678_v16, %v162_v19  ;;  %v163_v22 = vsel %vm161_vm12, %v678_v16, %v162_v19  ;;  %648 = vmatpush3.bf16.msra.mxu1 %v647_v44 }
  0xf7   :  { %v271_v23 = vsel %vm264_vm13, %v267_v21, %v270_v20  ;;  %v167_v24 = vsel %vm160_vm14, %v163_v22, %v166_v59  ;;  %649 = vmatprep.subr.bf16.mxu1 %v768_v30 }
  0xf8   :  { %v272_v25 = vsel %vm158_vm15, nan, %v271_v23  ;;  %v168_v26 = vsel %vm158_vm15, nan, %v167_v24 }
  0xf9   :  { %376 = vmatprep.mubr.f32.mxu0 %v272_v25 }
  0xfa   :  { %377 = vmatmul.mubr.f32.vlgmr.msra.gmra.mrb[0].mxu0 %v168_v26  ;;  %651 = vmatpush3.bf16.msra.mxu1 %v650_v48 }
  0xfb   :  { %652 = vmatprep.subr.bf16.mxu1 %v768_v30 }
  0xfe   :  { %654 = vmatpush3.bf16.msra.mxu1 %v653_v51 }
 0x1cd   :  { %v544_v52 = vpop.f32.mrb[0].mxu0 }
 0x1ce   :  { %v545_v54 = vpop.f32.mrb[1].mxu0 }
 0x1cf   :  { %v546_v55 = vadd.f32 %v545_v54, %v544_v52 }
 0x1d1   :  { %v379_v56 = vadd.f32 %v546_v55, %v509_v53 }
 0x1d3   :  { %v510_v58 = vmul.f32 -1.442695, %v379_v56 }
 0x1d5   :  { %681 = vpow2.f32 %v510_v58 }
 0x1df   :  { %v682_v60 = vpop.eup %681 }
 0x1e0   :  { %v385_v61 = vadd.f32 1.0, %v682_v60 }
 0x1e2   :  { %683 = vrcp.f32 %v385_v61 }
 0x1ec   :  { %v684_v62 = vpop.eup %683 }
 0x1ed   :  { %v388_v63 = vmul.f32 %v684_v62, %v379_v56 }
 0x1ef   :  { %597 = vmatmul.mubr.f32.vlgmr.msra.gmra.mrb[0].mxu1 %v388_v63 }
 0x2c2   :  { %v480_v1 = vpop.f32.mrb[0].mxu1 }
 0x2c3   :  { %v481_v2 = vadd.f32 %v511_v0, %v480_v1  ;;  %v598_v3 = vpop.f32.mrb[1].mxu1 }
 0x2c5   :  { %484 = vst [vmem:[#allocation8] sm:$0xff] %v481_v2 }
 0x2c6   :  { %740 = shalt.err (!%p737_p6)
}
 0x2c7   :  { %s741_s26 = scalar_lea.hbm %s873_s5, 128 }
 0x2c8   :  { %p742_p7 = scmp.ne.s32.totalorder %s873_s5, %s741_s26  ;;  %p745_p8 = scmp.lt.u32.totalorder %s741_s26, %s873_s5 }
 0x2ca   :  { %p747_p9 = pnand %p745_p8, %p742_p7 }
 0x2cc   :  { %750 = shalt.err (!%p747_p9)
}
 0x2cd   :  { %494 = dma.vmem_to_hbm [thread:$0]  %s492_s23, 128, %s873_s5, [#allocation5]  }
 0x2ce   :  { %755 = dma.done.wait [#allocation5], 128  }
 0x2cf   :  { %756 = vsyncadd [#allocation5], 4294967168 }
 0x2d0   :  { %498 = vsyncpa [#allocation4], 1 }
 0x2d1   :  { %499 = vsyncpa [#allocation7], 1 }
 0x2d2   :  { %500 = vsyncpa [#allocation5], 1 }

</bundles_post_ra>
